<compile_context>
chip_gen: v6e
topology: v6e:2x2x1
jax: 0.10.0
libtpu: 0.0.40
codegen_flags: <defaults>
</compile_context>

<pallas_src>
from functools import partial

import jax
import jax.numpy as jnp
from jax.experimental import pallas as pl
from jax.experimental.pallas import tpu as pltpu


# ----------------------------------------------------------------------------
# Helpers
# ----------------------------------------------------------------------------
def _round_up(x, m):
    return ((x + m - 1) // m) * m


def _pick_tile(n, target):
    """Largest tile <= target that divides n and is a multiple of 8, else n."""
    if n <= target:
        return n
    for t in range(min(target, n), 7, -1):
        if n % t == 0 and t % 8 == 0:
            return t
    return n


def _tpu_config():
    """Generation-aware tile defaults + VMEM capacity (falls back safely)."""
    try:
        vmem_cap = int(pltpu.get_tpu_info().vmem_capacity_bytes)
    except Exception:
        vmem_cap = 64 << 20
    if vmem_cap >= (96 << 20):
        # v5e / v6e: 128 MiB VMEM -> bigger tiles (fewer KV re-streams, fewer
        # per-grid-step overheads; the 0.8-1.4 TB/s HBM is the bottleneck).
        return dict(vmem_cap=vmem_cap, tile_q=512, tile_k=512, tile_n=512)
    # v7x: 64 MiB VMEM per TensorCore -> smaller tiles keep double-buffering.
    return dict(vmem_cap=vmem_cap, tile_q=256, tile_k=256, tile_n=256)


def _vmem_limit(need_bytes, vmem_cap):
    """Scoped-VMEM limit: at least 32 MiB, at most 0.75x physical capacity."""
    cap = (vmem_cap * 3) // 4
    return int(min(max(int(need_bytes), 32 << 20), cap))


def _attn_tiles(n, tq, tk):
    """Pad N to the tile granule; (Npad, TQ, TK). Padding is always < TK of
    the first KV tile (padding sits at the end), so masking stays NaN-free."""
    t = max(tq, tk)
    if n <= t:
        npad = _round_up(n, 8)
        return npad, npad, npad
    return _round_up(n, t), tq, tk


# ----------------------------------------------------------------------------
# Kernels
# ----------------------------------------------------------------------------
def _qkv_kernel(*refs, matmul_dtype, add_bias):
    # add_bias=True : (x_ref, w_ref, b_ref, q_ref, k_ref, v_ref)
    # add_bias=False: (x_ref, w_ref, q_ref, k_ref, v_ref)
    if add_bias:
        x_ref, w_ref, b_ref, q_ref, k_ref, v_ref = refs
    else:
        x_ref, w_ref, q_ref, k_ref, v_ref = refs
        b_ref = None
    C = q_ref.shape[-1]
    x = x_ref[...].astype(matmul_dtype)                     # (TN, Cin)
    w = w_ref[...]                                          # (Cin, 3C), pre-cast bf16
    y = jnp.dot(x, w, preferred_element_type=jnp.float32)   # f32 accumulation on MXU
    if add_bias:
        y = y + b_ref[...]                                  # (1, 3C) f32 broadcast
    # Split the fused projection into separate lane-dense q/k/v outputs so the
    # attention kernel only streams the bytes it actually uses.
    q_ref[...] = y[:, 0:C].astype(q_ref.dtype)
    k_ref[...] = y[:, C:2 * C].astype(k_ref.dtype)
    v_ref[...] = y[:, 2 * C:3 * C].astype(v_ref.dtype)


def _linear_kernel(*refs, matmul_dtype, add_bias):
    # add_bias=True : (x_ref, w_ref, b_ref, o_ref)
    # add_bias=False: (x_ref, w_ref, o_ref)
    if add_bias:
        x_ref, w_ref, b_ref, o_ref = refs
    else:
        x_ref, w_ref, o_ref = refs
        b_ref = None
    x = x_ref[...].astype(matmul_dtype)                     # no-op if already bf16
    w = w_ref[...]                                          # pre-cast bf16 in HBM
    y = jnp.dot(x, w, preferred_element_type=jnp.float32)
    if add_bias:
        y = y + b_ref[...]
    o_ref[...] = y.astype(o_ref.dtype)


def _flash_attn_kernel(q_ref, k_ref, v_ref, o_ref, qs_ref, m_ref, l_ref, acc_ref, *,
                       num_heads, head_dim, seq_len, mask_keys, matmul_dtype):
    # q_ref : (TQ, C) bf16 query tile (scale already folded into w_qkv)
    # k_ref : (TK, C) bf16 key tile       v_ref: (TK, C) bf16 value tile
    # o_ref : (TQ, C) lane-dense context output
    # qs_ref: (TQ, H, D) hoisted query layout (written once per q-tile)
    # m_ref/l_ref: (H, TQ) f32 online-softmax state, acc_ref: (H, TQ, D) f32
    H, D = num_heads, head_dim
    C = H * D
    TQ = q_ref.shape[0]
    TK = k_ref.shape[0]
    ki = pl.program_id(2)

    @pl.when(ki == 0)
    def _():
        # Hoist query prep out of the KV loop: relayout once per q-tile.
        qs_ref[...] = q_ref[...].reshape(TQ, H, D)
        m_ref[...] = jnp.full(m_ref.shape, -jnp.inf, jnp.float32)
        l_ref[...] = jnp.zeros(l_ref.shape, jnp.float32)
        acc_ref[...] = jnp.zeros(acc_ref.shape, jnp.float32)

    k = k_ref[...].reshape(TK, H, D)
    v = v_ref[...].reshape(TK, H, D)

    # All heads at once on the MXU (contraction dim = head_dim under-fills the
    # MXU, so batching over H + large TQ/TK amortizes fill/drain). f32 acc.
    s = jax.lax.dot_general(
        qs_ref[...], k,
        dimension_numbers=(((2,), (2,)), ((1,), (1,))),
        preferred_element_type=jnp.float32,
    )                                                                  # (H,TQ,TK)

    if mask_keys:  # static: only emitted when N was padded
        key_idx = ki * TK + jax.lax.broadcasted_iota(jnp.int32, (1, 1, TK), 2)
        s = jnp.where(key_idx < seq_len, s, -jnp.inf)

    # Online softmax update; only one (H,TQ,TK) f32 temporary stays live.
    m_prev = m_ref[...]                                                # (H,TQ)
    m_new = jnp.maximum(m_prev, jnp.max(s, axis=-1))                   # (H,TQ)
    p = jnp.exp(s - m_new[:, :, None])                                 # (H,TQ,TK)
    alpha = jnp.exp(m_prev - m_new)                                    # (H,TQ)
    l_ref[...] = alpha * l_ref[...] + jnp.sum(p, axis=-1)
    pv = jax.lax.dot_general(
        p.astype(matmul_dtype), v,
        dimension_numbers=(((2,), (0,)), ((0,), (1,))),
        preferred_element_type=jnp.float32,
    )                                                                  # (H,TQ,D)
    acc_ref[...] = alpha[:, :, None] * acc_ref[...] + pv
    m_ref[...] = m_new

    @pl.when(ki == pl.num_programs(2) - 1)
    def _():
        inv_l = pl.reciprocal(l_ref[...], approx=True)                 # EUP slot
        ctx = acc_ref[...] * inv_l[:, :, None]                         # (H,TQ,D)
        # Lane-dense (TQ, C) slab in exactly the layout the proj linear reads.
        o_ref[...] = jnp.transpose(ctx, (1, 0, 2)).reshape(TQ, C).astype(o_ref.dtype)


# ----------------------------------------------------------------------------
# Wrappers
# ----------------------------------------------------------------------------
def _pallas_qkv(x, w, b, *, tile_n, matmul_dtype, vmem_cap):
    """x: (B,N,Cin), w: (Cin,3C) bf16 (Q cols pre-scaled), b: (3C,) f32 or None
    -> (q, k, v) each (B, N, C) in matmul_dtype."""
    B, N, Cin = x.shape
    Cout = w.shape[1]
    C = Cout // 3
    TN = _pick_tile(N, tile_n)
    grid = (B, N // TN)
    add_bias = b is not None

    in_specs = [
        pl.BlockSpec((None, TN, Cin), lambda b_, n_: (b_, n_, 0)),
        pl.BlockSpec((Cin, Cout), lambda b_, n_: (0, 0)),
    ]
    args = [x, w]
    if add_bias:
        in_specs.append(pl.BlockSpec((1, Cout), lambda b_, n_: (0, 0)))
        args.append(b.reshape(1, Cout))

    out_shape = tuple(jax.ShapeDtypeStruct((B, N, C), matmul_dtype) for _ in range(3))
    out_specs = [pl.BlockSpec((None, TN, C), lambda b_, n_: (b_, n_, 0)) for _ in range(3)]

    need = (2 * TN * Cin * x.dtype.itemsize           # x blocks (double-buffered)
            + 2 * Cin * Cout * w.dtype.itemsize       # weight blocks
            + Cout * 4                                # bias
            + 3 * 2 * TN * C * 2                      # q/k/v output blocks
            + TN * Cout * 4) + (4 << 20)              # f32 matmul result

    return pl.pallas_call(
        partial(_qkv_kernel, matmul_dtype=matmul_dtype, add_bias=add_bias),
        out_shape=out_shape,
        grid_spec=pltpu.PrefetchScalarGridSpec(
            num_scalar_prefetch=0, grid=grid,
            in_specs=in_specs, out_specs=out_specs),
        compiler_params=pltpu.CompilerParams(
            dimension_semantics=("parallel", "parallel"),
            vmem_limit_bytes=_vmem_limit(need, vmem_cap)),
    )(*args)


def _pallas_linear(x, w, b, *, out_dtype, tile_n, matmul_dtype, vmem_cap):
    """x: (B,N,Cin), w: (Cin,Cout) bf16, b: (Cout,) f32 or None -> (B,N,Cout)."""
    B, N, Cin = x.shape
    Cout = w.shape[1]
    TN = _pick_tile(N, tile_n)
    grid = (B, N // TN)
    add_bias = b is not None

    in_specs = [
        pl.BlockSpec((None, TN, Cin), lambda b_, n_: (b_, n_, 0)),
        pl.BlockSpec((Cin, Cout), lambda b_, n_: (0, 0)),
    ]
    args = [x, w]
    if add_bias:
        in_specs.append(pl.BlockSpec((1, Cout), lambda b_, n_: (0, 0)))
        args.append(b.reshape(1, Cout))

    # TODO(synk): the constant-index weight block is still double-buffered by
    # the auto-pipeliner; single-buffering it (pl.Buffered(1)) would reclaim a
    # further Cin*Cout*2 bytes of VMEM.
    need = (2 * TN * Cin * x.dtype.itemsize + 2 * Cin * Cout * w.dtype.itemsize
            + Cout * 4 + 2 * TN * Cout * jnp.dtype(out_dtype).itemsize
            + TN * Cout * 4) + (4 << 20)

    return pl.pallas_call(
        partial(_linear_kernel, matmul_dtype=matmul_dtype, add_bias=add_bias),
        out_shape=jax.ShapeDtypeStruct((B, N, Cout), out_dtype),
        grid_spec=pltpu.PrefetchScalarGridSpec(
            num_scalar_prefetch=0, grid=grid, in_specs=in_specs,
            out_specs=pl.BlockSpec((None, TN, Cout), lambda b_, n_: (b_, n_, 0))),
        compiler_params=pltpu.CompilerParams(
            dimension_semantics=("parallel", "parallel"),
            vmem_limit_bytes=_vmem_limit(need, vmem_cap)),
    )(*args)


def _pallas_attention(q, k, v, num_heads, *, seq_len, tile_q, tile_k,
                      matmul_dtype, vmem_cap):
    """q/k/v: (B, Npad, C) bf16 (q pre-scaled) -> context (B, Npad, C) bf16."""
    B, Npad, C = q.shape
    H = num_heads
    D = C // H
    TQ, TK = tile_q, tile_k
    grid = (B, Npad // TQ, Npad // TK)
    mask_keys = seq_len < Npad

    q_spec = pl.BlockSpec((None, TQ, C), lambda b, qi, ki: (b, qi, 0))
    k_spec = pl.BlockSpec((None, TK, C), lambda b, qi, ki: (b, ki, 0))
    v_spec = pl.BlockSpec((None, TK, C), lambda b, qi, ki: (b, ki, 0))
    out_spec = pl.BlockSpec((None, TQ, C), lambda b, qi, ki: (b, qi, 0))

    bt = jnp.dtype(matmul_dtype).itemsize
    Hp = _round_up(H, 8)
    Dl = _round_up(D, 128)
    need = (2 * TQ * C * bt                # q blocks
            + 4 * TK * C * bt              # k + v blocks (double-buffered)
            + 2 * TQ * C * bt              # output blocks
            + TQ * Hp * Dl * bt            # hoisted query scratch (padded layout)
            + H * TQ * Dl * 4              # f32 accumulator (lane-padded)
            + 2 * Hp * TQ * 4              # m / l state
            + 2 * H * TQ * TK * 4          # score / prob f32 temporaries headroom
            ) + (4 << 20)

    return pl.pallas_call(
        partial(_flash_attn_kernel, num_heads=H, head_dim=D, seq_len=seq_len,
                mask_keys=mask_keys, matmul_dtype=matmul_dtype),
        out_shape=jax.ShapeDtypeStruct((B, Npad, C), matmul_dtype),
        grid_spec=pltpu.PrefetchScalarGridSpec(
            num_scalar_prefetch=0, grid=grid,
            in_specs=[q_spec, k_spec, v_spec],
            out_specs=out_spec,
            scratch_shapes=[
                pltpu.VMEM((TQ, H, D), matmul_dtype),   # hoisted, pre-scaled q
                pltpu.VMEM((H, TQ), jnp.float32),       # running max m
                pltpu.VMEM((H, TQ), jnp.float32),       # running sum l
                pltpu.VMEM((H, TQ, D), jnp.float32),    # running PV accumulator
            ]),
        compiler_params=pltpu.CompilerParams(
            dimension_semantics=("parallel", "parallel", "arbitrary"),
            vmem_limit_bytes=_vmem_limit(need, vmem_cap)),
    )(q, k, v)


def attention_forward(x, params, num_heads, *, qk_scale=None,
                      matmul_dtype=jnp.bfloat16):
    """Forward pass of the PyTorch `Attention` module.

    x: (B, N, C); params: w_qkv (C,3C), b_qkv (3C,) or None (qkv_bias=False),
    w_proj (C,C), b_proj (C,). Weights stored pre-transposed (in, out).
    """
    B, N, C = x.shape
    D = C // num_heads
    scale = float(qk_scale) if qk_scale is not None else float(D) ** (-0.5)

    cfg = _tpu_config()

    # Fold the attention scale into the Q columns of the qkv projection and
    # pre-cast all weights to the MXU operand dtype ONCE, in HBM.
    w_qkv = params["w_qkv"]
    w_qkv = jnp.concatenate([w_qkv[:, :C] * scale, w_qkv[:, C:]],
                            axis=1).astype(matmul_dtype)
    b_qkv = params.get("b_qkv")
    if b_qkv is not None:
        b_qkv = jnp.concatenate([b_qkv[:C] * scale, b_qkv[C:]]).astype(jnp.float32)
    w_proj = params["w_proj"].astype(matmul_dtype)
    b_proj = params["b_proj"].astype(jnp.float32)

    # Pad N to the tile granule; padded keys are masked inside the kernel.
    Npad, TQ, TK = _attn_tiles(N, cfg["tile_q"], cfg["tile_k"])
    xp = jnp.pad(x, ((0, 0), (0, Npad - N), (0, 0))) if Npad != N else x

    # Fused qkv projection, split into lane-dense bf16 q/k/v outputs.
    q, k, v = _pallas_qkv(xp, w_qkv, b_qkv, tile_n=cfg["tile_n"],
                          matmul_dtype=matmul_dtype, vmem_cap=cfg["vmem_cap"])

    # Flash-style, all-heads attention (bf16 operands, f32 online softmax).
    ctx = _pallas_attention(q, k, v, num_heads, seq_len=N, tile_q=TQ, tile_k=TK,
                            matmul_dtype=matmul_dtype, vmem_cap=cfg["vmem_cap"])

    # Output projection back to the input dtype.
    out = _pallas_linear(ctx, w_proj, b_proj, out_dtype=x.dtype,
                         tile_n=cfg["tile_n"], matmul_dtype=matmul_dtype,
                         vmem_cap=cfg["vmem_cap"])

    if Npad != N:
        out = out[:, :N, :]
    # TODO(synk): attn_drop / proj_drop are p=0.0 (identity) -> omitted.
    return out


# ----------------------------------------------------------------------------
# Pure-JAX reference (for correctness check)
# ----------------------------------------------------------------------------
def attention_reference(x, params, num_heads):
    B, N, C = x.shape
    H = num_heads
    D = C // H
    scale = D ** (-0.5)
    qkv = x @ params["w_qkv"]
    if params.get("b_qkv") is not None:
        qkv = qkv + params["b_qkv"]
    qkv = qkv.reshape(B, N, 3, H, D).transpose(2, 0, 3, 1, 4)
    q, k, v = qkv[0], qkv[1], qkv[2]
    attn = jnp.einsum("bhnd,bhmd->bhnm", q, k) * scale
    attn = jax.nn.softmax(attn, axis=-1)
    ctx = jnp.einsum("bhnm,bhmd->bhnd", attn, v)
    ctx = ctx.transpose(0, 2, 1, 3).reshape(B, N, C)
    return ctx @ params["w_proj"] + params["b_proj"]


# ----------------------------------------------------------------------------
# Main
# ----------------------------------------------------------------------------
if __name__ == "__main__":
    key = jax.random.PRNGKey(0)
    k_x, k_wqkv, k_wproj, k_bproj, k_x2, k_bqkv = jax.random.split(key, 6)

    # Test 1: qkv_bias=False, 8-divisible sequence length (no padding path).
    B, N, C, H = 2, 8, 32, 8
    x = jax.random.normal(k_x, (B, N, C), dtype=jnp.float32)
    params = {
        "w_qkv": 0.02 * jax.random.normal(k_wqkv, (C, 3 * C), dtype=jnp.float32),
        "b_qkv": None,
        "w_proj": 0.02 * jax.random.normal(k_wproj, (C, C), dtype=jnp.float32),
        "b_proj": 0.01 * jax.random.normal(k_bproj, (C,), dtype=jnp.float32),
    }
    out = jax.block_until_ready(attention_forward(x, params, H))
    ref = attention_reference(x, params, H)
    assert out.shape == (B, N, C), out.shape
    err = float(jnp.max(jnp.abs(out - ref)))
    # bf16 MXU operands / intermediates + approx reciprocal -> relaxed tol.
    assert jnp.allclose(out, ref, atol=2e-2, rtol=2e-2), err

    # Test 2: qkv_bias=True, N not a multiple of 8 (exercises pad + key mask).
    B2, N2, C2, H2 = 2, 13, 32, 4
    x2 = jax.random.normal(k_x2, (B2, N2, C2), dtype=jnp.float32)
    params2 = {
        "w_qkv": 0.02 * jax.random.normal(k_wqkv, (C2, 3 * C2), dtype=jnp.float32),
        "b_qkv": 0.01 * jax.random.normal(k_bqkv, (3 * C2,), dtype=jnp.float32),
        "w_proj": 0.02 * jax.random.normal(k_wproj, (C2, C2), dtype=jnp.float32),
        "b_proj": 0.01 * jax.random.normal(k_bproj, (C2,), dtype=jnp.float32),
    }
    out2 = jax.block_until_ready(attention_forward(x2, params2, H2))
    ref2 = attention_reference(x2, params2, H2)
    assert out2.shape == (B2, N2, C2), out2.shape
    err2 = float(jnp.max(jnp.abs(out2 - ref2)))
    assert jnp.allclose(out2, ref2, atol=2e-2, rtol=2e-2), err2

    print("KERNEL_OK")
</pallas_src>

<mosaic_0001>
module attributes {stable_mosaic.version = 11 : i64} {
  func.func @_qkv_kernel(%arg0: i32, %arg1: i32, %arg2: memref<1x8x32xf32, #tpu.memory_space<vmem>>, %arg3: memref<32x96xbf16, #tpu.memory_space<vmem>>, %arg4: memref<1x8x32xbf16, #tpu.memory_space<vmem>>, %arg5: memref<1x8x32xbf16, #tpu.memory_space<vmem>>, %arg6: memref<1x8x32xbf16, #tpu.memory_space<vmem>>) attributes {dimension_semantics = [#tpu.dimension_semantics<parallel>, #tpu.dimension_semantics<parallel>], iteration_bounds = array<i64: 2, 1>, scalar_prefetch = 0 : i64, scratch_operands = 0 : i64, tpu.core_type = #tpu.core_type<tc>, window_params = [{transform_indices = @transform_0, window_bounds = array<i64: 1, 8, 32>}, {pipeline_mode = #tpu.pipeline_mode<synchronous>, transform_indices = @transform_1, window_bounds = array<i64: 32, 96>}, {transform_indices = @transform_2, window_bounds = array<i64: 1, 8, 32>}, {transform_indices = @transform_3, window_bounds = array<i64: 1, 8, 32>}, {transform_indices = @transform_4, window_bounds = array<i64: 1, 8, 32>}]} {
    %c0 = arith.constant 0 : index
    %c0_0 = arith.constant 0 : index
    %c0_1 = arith.constant 0 : index
    %0 = vector.load %arg2[%c0, %c0_0, %c0_1] : memref<1x8x32xf32, #tpu.memory_space<vmem>>, vector<1x8x32xf32>
    %1 = vector.shape_cast %0 : vector<1x8x32xf32> to vector<8x32xf32>
    %2 = arith.truncf %1 : vector<8x32xf32> to vector<8x32xbf16>
    %c0_2 = arith.constant 0 : index
    %c0_3 = arith.constant 0 : index
    %3 = vector.load %arg3[%c0_2, %c0_3] : memref<32x96xbf16, #tpu.memory_space<vmem>>, vector<32x96xbf16>
    %cst = arith.constant dense<0.000000e+00> : vector<8x96xf32>
    %4 = tpu.matmul %2, %3, %cst {dimension_numbers = #tpu.dot_dimension_numbers<[1], [0], [0], [1], [0, 0, 1, 1], [], []>} : vector<8x32xbf16>, vector<32x96xbf16>, vector<8x96xf32> -> vector<8x96xf32>
    %5 = vector.extract_strided_slice %4 {offsets = [0, 0], sizes = [8, 32], strides = [1, 1]} : vector<8x96xf32> to vector<8x32xf32>
    %6 = arith.truncf %5 : vector<8x32xf32> to vector<8x32xbf16>
    %c0_4 = arith.constant 0 : index
    %c0_5 = arith.constant 0 : index
    %c0_6 = arith.constant 0 : index
    %7 = vector.load %arg4[%c0_4, %c0_5, %c0_6] : memref<1x8x32xbf16, #tpu.memory_space<vmem>>, vector<1x8x32xbf16>
    %8 = vector.shape_cast %7 : vector<1x8x32xbf16> to vector<8x32xbf16>
    %9 = vector.shape_cast %6 : vector<8x32xbf16> to vector<1x8x32xbf16>
    tpu.vector_store %arg4[%c0_4, %c0_5, %c0_6], %9 {strides = array<i32>} : memref<1x8x32xbf16, #tpu.memory_space<vmem>>, vector<1x8x32xbf16>,
    %10 = vector.extract_strided_slice %4 {offsets = [0, 32], sizes = [8, 32], strides = [1, 1]} : vector<8x96xf32> to vector<8x32xf32>
    %11 = arith.truncf %10 : vector<8x32xf32> to vector<8x32xbf16>
    %c0_7 = arith.constant 0 : index
    %c0_8 = arith.constant 0 : index
    %c0_9 = arith.constant 0 : index
    %12 = vector.load %arg5[%c0_7, %c0_8, %c0_9] : memref<1x8x32xbf16, #tpu.memory_space<vmem>>, vector<1x8x32xbf16>
    %13 = vector.shape_cast %12 : vector<1x8x32xbf16> to vector<8x32xbf16>
    %14 = vector.shape_cast %11 : vector<8x32xbf16> to vector<1x8x32xbf16>
    tpu.vector_store %arg5[%c0_7, %c0_8, %c0_9], %14 {strides = array<i32>} : memref<1x8x32xbf16, #tpu.memory_space<vmem>>, vector<1x8x32xbf16>,
    %15 = vector.extract_strided_slice %4 {offsets = [0, 64], sizes = [8, 32], strides = [1, 1]} : vector<8x96xf32> to vector<8x32xf32>
    %16 = arith.truncf %15 : vector<8x32xf32> to vector<8x32xbf16>
    %c0_10 = arith.constant 0 : index
    %c0_11 = arith.constant 0 : index
    %c0_12 = arith.constant 0 : index
    %17 = vector.load %arg6[%c0_10, %c0_11, %c0_12] : memref<1x8x32xbf16, #tpu.memory_space<vmem>>, vector<1x8x32xbf16>
    %18 = vector.shape_cast %17 : vector<1x8x32xbf16> to vector<8x32xbf16>
    %19 = vector.shape_cast %16 : vector<8x32xbf16> to vector<1x8x32xbf16>
    tpu.vector_store %arg6[%c0_10, %c0_11, %c0_12], %19 {strides = array<i32>} : memref<1x8x32xbf16, #tpu.memory_space<vmem>>, vector<1x8x32xbf16>,
    return
  }
  func.func @transform_0(%arg0: i32, %arg1: i32) -> (i32, i32, i32) {
    %c0_i32 = arith.constant 0 : i32
    %c0_i32_0 = arith.constant 0 : i32
    return %arg0, %arg1, %c0_i32 : i32, i32, i32
  }
  func.func @transform_1(%arg0: i32, %arg1: i32) -> (i32, i32) {
    %c0_i32 = arith.constant 0 : i32
    %c0_i32_0 = arith.constant 0 : i32
    %c0_i32_1 = arith.constant 0 : i32
    return %c0_i32, %c0_i32_0 : i32, i32
  }
  func.func @transform_2(%arg0: i32, %arg1: i32) -> (i32, i32, i32) {
    %c0_i32 = arith.constant 0 : i32
    %c0_i32_0 = arith.constant 0 : i32
    return %arg0, %arg1, %c0_i32 : i32, i32, i32
  }
  func.func @transform_3(%arg0: i32, %arg1: i32) -> (i32, i32, i32) {
    %c0_i32 = arith.constant 0 : i32
    %c0_i32_0 = arith.constant 0 : i32
    return %arg0, %arg1, %c0_i32 : i32, i32, i32
  }
  func.func @transform_4(%arg0: i32, %arg1: i32) -> (i32, i32, i32) {
    %c0_i32 = arith.constant 0 : i32
    %c0_i32_0 = arith.constant 0 : i32
    return %arg0, %arg1, %c0_i32 : i32, i32, i32
  }
}

</mosaic_0001>

<bundles_post_ra>
// kernel: tpu_custom_call.1
= control target key start
LH: loop header
LB: loop body
LE: loop exit
PB: predicated region body
PF: predicated region fallthrough
CT: control target
= control target key end

     0   :  { %s1154_s0 = inlined_call_operand.hbm [shape: f32[2,8,32], index: 0, kind: input, shape index: {}]   ;;  %s1155_s1 = inlined_call_operand.hbm [shape: bf16[32,96], index: 1, kind: input, shape index: {}]   ;;  %s1156_s2 = inlined_call_operand.hbm [shape: bf16[2,8,32], index: 2, kind: output, shape index: {0}]   ;;  %s1157_s3 = inlined_call_operand.hbm [shape: bf16[2,8,32], index: 3, kind: output, shape index: {1}]   ;;  %s1158_s4 = inlined_call_operand.hbm [shape: bf16[2,8,32], index: 4, kind: output, shape index: {2}]  }
   0x1   :  { %1161 = sst [smem:[#allocation15_spill]] %s1155_s1 }
   0x2   :  { %10 = vsyncpa [#allocation3], 0 }
   0x3   :  { %12 = vsyncpa [#allocation3 + $0x1], 0 }
   0x4   :  { %13 = vsyncpa [#allocation6], 0 }
   0x5   :  { %14 = vsyncpa [#allocation4], 0 }
   0x6   :  { %16 = vsyncpa [#allocation4 + $0x1], 0 }
   0x7   :  { %17 = vsyncpa [#allocation9], 0 }
   0x8   :  { %19 = vsyncpa [#allocation9 + $0x1], 0  ;;  %s910_s15 = smov 0   ;;  %s912_s16 = smov 0  }
   0x9   :  { %s914_s17 = smov 0   ;;  %s916_s18 = smov 0  }
   0xa   :  { %s918_s19 = smov 0   ;;  %s920_s20 = smov 0  }
   0xb LB: > { %s941_s21 = sadd.s32 4294967295, %s872_s20   ;;  %s1159_s22 = sadd.s32 4294967294, %s872_s20   ;;  %s872_s20 = sphi %s920_s20, %s25_s20   ;;  %s868_s19 = sphi %s918_s19, %s1180_s19   ;;  %s864_s18 = sphi %s916_s18, %s1179_s18   ;;  %s860_s17 = sphi %s914_s17, %s1178_s17   ;;  %s856_s16 = sphi %s912_s16, %s1177_s16   ;;  %s852_s15 = sphi %s910_s15, %s1176_s15  }
   0xc   : > { %p59_p0 = scmp.ne.s32.totalorder %s856_s16, %s852_s15  ;;  %p1160_p1 = scmp.eq.s32.totalorder %s941_s21, 0 }
   0xd   : > { %p112_p3 = scmp.eq.s32.totalorder %s1159_s22, 1  ;;  %p552_p5 = scmp.ge.s32.totalorder %s872_s20, 1 }
   0xe   : > { %p952_p4 = por %p1160_p1, %p59_p0  ;;  %p175_p7 = scmp.lt.s32.totalorder %s872_s20, 3 }
   0xf   : > { %p957_p6 = por %p112_p3, %p59_p0  ;;  %s874_s26 = smov [#allocation5]  }
  0x10   : > { %p962_p8 = pnand %p552_p5, %p175_p7  ;;  %s187_s27 = sshll.u32 %s874_s26, 4  ;;  %s188_s27 = int_to_ptr.vmem [resolvable:$true] %s187_s27 }
  0x11   : > { %s1163_s24 = scalar_select %p957_p6, 1, 0 }
  0x12   : > { %p599_p9 = pneg %p962_p8  ;;  %s37_s29 = sadd.s32 1, %s868_s19 }
  0x13   : > { %s689_s30 = scalar_lea.vmem %s188_s27, 256  ;;  %p697_p5 = scmp.lt.s32.totalorder %s188_s27, %s188_s27 }
  0x14   : > { %p971_p11 = pnand %p599_p9, %p1160_p1  ;;  %p690_p13 = scmp.ne.s32.totalorder %s188_s27, %s689_s30 }
  0x15   : > { %p698_p7 = scmp.lt.s32.totalorder %s689_s30, %s689_s30 }
  0x16   : > { %p680_p12 = pneg %p971_p11 }
  0x17   : > { %p699_p2 = por %p698_p7, %p697_p5 }
  0x18   : > { %p692_p0 = pnand %p690_p13, %p680_p12 }
  0x1a   : > { %p693_p3 = pneg %p692_p0 }
  0x1c   : > { %p700_p6 = pnand %p699_p2, %p693_p3 }
  0x1e   : > { %703 = shalt.err (!%p700_p6)
}
  0x1f   : > { %s875_s5 = smov 64   ;;  %s876_s6 = smov 4  }
  0x20   : > { %s1166_s1 = sld [smem:[#allocation15_spill]]  ;;  %p39_p2 = scmp.ge.s32.totalorder %s37_s29, 2 }
  0x21   : > { %s46_s9 = sadd.s32 1, %s860_s17  ;;  %p53_p6 = scmp.ne.s32.totalorder %s860_s17, %s856_s16 }
  0x22   : > { %p54_p9 = scmp.eq.s32.totalorder %s872_s20, 0  ;;  %s1182_s29 = smov (%p39_p2, %s37_s29), 0 }
  0x23   : > { %p1168_p13 = scmp.eq.s32.totalorder %s941_s21, 1  ;;  %s41_s12 = ssub.s32 %s868_s19, %s1182_s29 }
  0x24   : > { %p989_p12 = por %p54_p9, %p53_p6  ;;  %p618_p3 = scmp.lt.s32.totalorder %s872_s20, 2 }
  0x25   : > { %p995_p0 = por %p1168_p13, %p53_p6  ;;  %s201_s13 = sand.u32 1, %s860_s17  }
  0x26   : > { %602 = dma.hbm_to_vmem [thread:$0]  (!%p971_p11), %s1166_s1, 256, %s188_s27, [#allocation6], %s875_s5, %s875_s5, %s876_s6  }
  0x27   : > { %p44_p11 = scmp.eq.s32.totalorder %s41_s12, 0  ;;  %s555_s14 = sshll.u32 %s201_s13, 3 }
  0x28   : > { %s556_s27 = sshll.u32 %s868_s19, 7  ;;  %s205_s6 = scalar_lea.vmem [#allocation2], %s555_s14 }
  0x29   : > { %s1004_s26 = scalar_select %p44_p11, %s860_s17, %s46_s9  }
  0x2a   : > { %s211_s5 = scalar_lea.hbm %s1154_s0, %s556_s27  ;;  %s213_s7 = sshll.u32 %s205_s6, 4  ;;  %s214_s7 = int_to_ptr.vmem [resolvable:$true] %s213_s7 }
  0x2b   : > { %p1012_p5 = pnand %p618_p3, %p989_p12  ;;  %s202_s22 = scalar_lea.sflag [#allocation3], %s201_s13 }
  0x2c   : > { %s717_s12 = scalar_lea.vmem %s214_s7, 128  ;;  %s877_s9 = smov [#allocation2]  }
  0x2d   : > { %p706_p7 = pneg %p1012_p5  ;;  %p718_p2 = scmp.ne.s32.totalorder %s214_s7, %s717_s12 }
  0x2e   : > { %s722_s1 = sshll.u32 %s877_s9, 4  ;;  %s723_s1 = int_to_ptr.vmem [resolvable:$false] %s722_s1 }
  0x2f   : > { %p720_p6 = pnand %p718_p2, %p706_p7  ;;  %s724_s27 = scalar_lea.vmem %s723_s1, 256 }
  0x30   : > { %p725_p13 = scmp.lt.s32.totalorder %s214_s7, %s723_s1  ;;  %p726_p11 = scmp.lt.s32.totalorder %s724_s27, %s717_s12 }
  0x31   : > { %p721_p9 = pneg %p720_p6 }
  0x32   : > { %p727_p10 = por %p726_p11, %p725_p13 }
  0x34   : > { %p728_p1 = pnand %p727_p10, %p721_p9 }
  0x36   : > { %731 = shalt.err (!%p728_p1)
}
  0x37   : > { %606 = dma.hbm_to_vmem [thread:$0]  (!%p1012_p5), %s211_s5, 128, %s214_s7, %s202_s22  }
  0x38   : > { %222 = sbr.rel (%p962_p8) target bundleno = 419 (0x1a3), region = 28  ;;  %s1023_s10 = sand.u32 (!%p962_p8), 1, %s856_s16  }
  0x39   : > { %s558_s13 = sshll.u32 (!%p962_p8), %s1023_s10, 3  ;;  %s225_s14 = scalar_lea.sflag (!%p962_p8), [#allocation3], %s1023_s10 }
  0x3a   : > { %s228_s28 = scalar_lea.vmem (!%p962_p8), [#allocation2], %s558_s13 }
  0x3d   : > { %835 = dma.done.wait (%p952_p4), %s225_s14, 128  }
  0x3e   : > { %837 = vsyncadd (%p952_p4), %s225_s14, 4294967168  ;;  %p1171_p1 = scmp.eq.s32.totalorder %s941_s21, 0 }
  0x40   : > { %839 = dma.done.wait (%p1171_p1), [#allocation6], 256   ;;  %p1172_p10 = pmov %p1171_p1 }
  0x41   : > { %v878_v0 = vmov 0.0   ;;  %vm879_vm0 = vmmov 0   ;;  %v676_v1 = vld [vmem:[#allocation5 + $0x8] sm:$0xff]   ;;  %v677_v2 = vld [vmem:[#allocation5] sm:$0xff]   ;;  %v268_v3 = vld [vmem:[%s228_s28] sm:$0xff]  ;;  %vm286_vm1 = vcmask 261120  }
  0x42   : > { %841 = vsyncadd (%p1172_p10), [#allocation6], 4294967040  ;;  %579 = vmatprep.subr.bf16.mxu0 %v878_v0  ;;  %583 = vmatprep.mubr.msk.bf16.mxu0 %vm879_vm0, %v878_v0  ;;  %v269_v4 = vpack.c.bf16 %v268_v3, %v268_v3  ;;  %s1036_s1 = sshll.u32 %s1023_s10, 2  ;;  %s1039_s22 = sshll.u32 %s864_s18, 6  ;;  %vm331_vm2 = vcmask 257024  }
  0x43   : > { %580 = vmatpush3.bf16.msra.mxu0 %v676_v1  ;;  %s252_s23 = scalar_lea.vmem [#allocation7], %s1036_s1  ;;  %s1046_s6 = scalar_lea.hbm %s1156_s2, %s1039_s22 }
  0x44   : > { %581 = vmatprep.subr.bf16.mxu0 %v878_v0  ;;  %s369_s25 = sshll.u32 %s252_s23, 4  ;;  %s880_s18 = smov 96   ;;  %s1048_s25 = int_to_ptr.vmem [resolvable:$true] %s369_s25 }
  0x45   : > { %s345_s7 = scalar_lea.sflag [#allocation4], %s1023_s10  ;;  %s732_s8 = scalar_lea.vmem %s1048_s25, 64 }
  0x46   : > { %p733_p4 = scmp.ne.s32.totalorder %s1048_s25, %s732_s8  ;;  %s881_s12 = smov [#allocation7]  }
  0x47   : > { %582 = vmatpush3.bf16.msra.mxu0 %v677_v2  ;;  %s736_s9 = sshll.u32 %s881_s12, 4  ;;  %s737_s9 = int_to_ptr.vmem [resolvable:$false] %s736_s9 }
  0x48   : > { %p734_p8 = pnand %p733_p4, %p995_p0  ;;  %s738_s27 = scalar_lea.vmem %s737_s9, 128 }
  0x49   : > { %p739_p3 = scmp.lt.s32.totalorder %s1048_s25, %s737_s9  ;;  %p740_p5 = scmp.lt.s32.totalorder %s738_s27, %s732_s8 }
  0x4a   : > { %584 = vmatmul.mubr.msk.bf16.vlgmr.msra.gmra.mxu0 %vm286_vm1, %v269_v4  ;;  %p735_p12 = pneg %p734_p8 }
  0x4b   : > { %p741_p7 = por %p740_p5, %p739_p3 }
  0x4d   : > { %p742_p2 = pnand %p741_p7, %p735_p12 }
 0x10a   : > { %v324_v5 = vpop.f32.mrf.mxu0 }
 0x10b   : > { %v330_v6 = vpack.c.bf16 %v324_v5, %v324_v5 }
 0x10c   : > { %v585_v7 = vpop.f32.mrf.mxu0 }
 0x10d   : > { %336 = vrot.lane.b32.xlu0 %v330_v6, %s880_s18  ;;  %332 = vst.msk [vmem:[%s252_s23] sm:$0xf] %vm331_vm2, %v330_v6 }
 0x10e   : > { %v327_v8 = vpop.f32.mrf.mxu0 }
 0x10f   : > { %745 = shalt.err (!%p742_p2)
}
 0x110   : > { %s746_s13 = scalar_lea.hbm %s1046_s6, 64  ;;  %s750_s28 = scalar_lea.hbm %s1156_s2, 128 }
 0x111   : > { %p747_p6 = scmp.ne.s32.totalorder %s1046_s6, %s746_s13  ;;  %p751_p11 = scmp.lt.s32.totalorder %s1046_s6, %s1156_s2 }
 0x112   : > { %p752_p1 = scmp.lt.s32.totalorder %s750_s28, %s746_s13 }
 0x113   : > { %p748_p9 = pnand %p747_p6, %p995_p0 }
 0x114   : > { %p753_p10 = por %p752_p1, %p751_p11 }
 0x115   : > { %p749_p13 = pneg %p748_p9 }
 0x117   : > { %p754_p4 = pnand %p753_p10, %p749_p13 }
 0x119   : > { %757 = shalt.err (!%p754_p4)
}
 0x11a   : > { %593 = dma.vmem_to_hbm [thread:$0]  (%p995_p0), %s1048_s25, 64, %s1046_s6, %s345_s7   ;;  %v586_v9 = vpop.f32.mrf.mxu0 }
 0x11b   : > { %s882_s5 = smov 64   ;;  %s349_s18 = sand.u32 1, %s941_s21  }
 0x11c   : > { %340 = vrot.lane.b32.xlu0 %v330_v6, %s882_s5  ;;  %s259_s8 = scalar_lea.vmem [#allocation8], %s1036_s1  ;;  %s1078_s13 = scalar_lea.hbm %s1157_s3, %s1039_s22 }
 0x11d   : > { %s383_s12 = sshll.u32 %s259_s8, 4  ;;  %s266_s10 = scalar_lea.vmem [#allocation10], %s1036_s1  ;;  %s1080_s12 = int_to_ptr.vmem [resolvable:$true] %s383_s12 }
 0x11e   : > { %s397_s25 = sshll.u32 %s266_s10, 4  ;;  %s1086_s6 = scalar_lea.sflag [#allocation9], %s349_s18  ;;  %s398_s25 = int_to_ptr.vmem [resolvable:$true] %s397_s25 }
 0x11f   : > { %s758_s21 = scalar_lea.vmem %s1080_s12, 64  ;;  %s883_s7 = smov [#allocation8]  }
 0x120   : > { %p759_p8 = scmp.ne.s32.totalorder %s1080_s12, %s758_s21  ;;  %s762_s14 = sshll.u32 %s883_s7, 4  ;;  %s763_s14 = int_to_ptr.vmem [resolvable:$false] %s762_s14 }
 0x121   : > { %s764_s28 = scalar_lea.vmem %s763_s14, 128  ;;  %p765_p5 = scmp.lt.s32.totalorder %s1080_s12, %s763_s14 }
 0x122   : > { %p760_p12 = pnand %p759_p8, %p995_p0  ;;  %p766_p7 = scmp.lt.s32.totalorder %s764_s28, %s758_s21 }
 0x124   : > { %p761_p3 = pneg %p760_p12  ;;  %p767_p2 = por %p766_p7, %p765_p5 }
 0x126   : > { %p768_p6 = pnand %p767_p2, %p761_p3 }
 0x17f   : > { %v337_v10 = vpop.permute.xlu0 %336 }
 0x180   : > { %339 = vst.msk [vmem:[%s259_s8] sm:$0xf] %vm331_vm2, %v337_v10 }
 0x181   : > { %771 = shalt.err (!%p768_p6)
}
 0x182   : > { %s772_s23 = scalar_lea.hbm %s1078_s13, 64  ;;  %s776_s18 = scalar_lea.hbm %s1157_s3, 128 }
 0x183   : > { %p773_p9 = scmp.ne.s32.totalorder %s1078_s13, %s772_s23  ;;  %p777_p1 = scmp.lt.s32.totalorder %s1078_s13, %s1157_s3 }
 0x184   : > { %p778_p10 = scmp.lt.s32.totalorder %s776_s18, %s772_s23 }
 0x185   : > { %p774_p13 = pnand %p773_p9, %p995_p0 }
 0x186   : > { %p779_p4 = por %p778_p10, %p777_p1 }
 0x187   : > { %p775_p11 = pneg %p774_p13 }
 0x189   : > { %p780_p8 = pnand %p779_p4, %p775_p11 }
 0x18b   : > { %783 = shalt.err (!%p780_p8)
}
 0x18c   : > { %594 = dma.vmem_to_hbm [thread:$0]  (%p995_p0), %s1080_s12, 64, %s1078_s13, %s1086_s6  }
 0x18d   : > { %s395_s7 = scalar_lea.hbm %s1158_s4, %s1039_s22  ;;  %s784_s14 = scalar_lea.vmem %s398_s25, 64 }
 0x18e   : > { %v341_v11 = vpop.permute.xlu0 %340  ;;  %p785_p12 = scmp.ne.s32.totalorder %s398_s25, %s784_s14  ;;  %s884_s28 = smov [#allocation10]  }
 0x18f   : > { %343 = vst.msk [vmem:[%s266_s10] sm:$0xf] %vm331_vm2, %v341_v11  ;;  %s788_s23 = sshll.u32 %s884_s28, 4  ;;  %s789_s23 = int_to_ptr.vmem [resolvable:$false] %s788_s23 }
 0x190   : > { %p786_p3 = pnand %p785_p12, %p995_p0  ;;  %s790_s30 = scalar_lea.vmem %s789_s23, 128 }
 0x191   : > { %p791_p7 = scmp.lt.s32.totalorder %s398_s25, %s789_s23  ;;  %p792_p2 = scmp.lt.s32.totalorder %s790_s30, %s784_s14 }
 0x192   : > { %p787_p5 = pneg %p786_p3 }
 0x193   : > { %p793_p6 = por %p792_p2, %p791_p7 }
 0x195   : > { %p794_p9 = pnand %p793_p6, %p787_p5 }
 0x197   : > { %797 = shalt.err (!%p794_p9)
}
 0x198   : > { %s798_s22 = scalar_lea.hbm %s395_s7, 64  ;;  %s802_s13 = scalar_lea.hbm %s1158_s4, 128 }
 0x199   : > { %p799_p13 = scmp.ne.s32.totalorder %s395_s7, %s798_s22  ;;  %p803_p10 = scmp.lt.s32.totalorder %s395_s7, %s1158_s4 }
 0x19a   : > { %p804_p4 = scmp.lt.s32.totalorder %s802_s13, %s798_s22 }
 0x19b   : > { %p800_p11 = pnand %p799_p13, %p995_p0 }
 0x19c   : > { %p805_p8 = por %p804_p4, %p803_p10 }
 0x19d   : > { %p801_p1 = pneg %p800_p11 }
 0x19f   : > { %p806_p12 = pnand %p805_p8, %p801_p1 }
 0x1a1   : > { %809 = shalt.err (!%p806_p12)
}
 0x1a2   : > { %595 = dma.vmem_to_hbm [thread:$0]  (%p995_p0), %s398_s25, 64, %s395_s7, %s1086_s6  }
 0x1a3 PF: > { %s409_s18 = sand.u32 1, %s852_s15   ;;  %p1173_p3 = scmp.ne.s32.totalorder %s1163_s24, 0 }
 0x1a4   : > { %p1174_p5 = scmp.ge.s32.totalorder %s872_s20, 2  ;;  %s410_s8 = scalar_lea.sflag [#allocation4], %s409_s18 }
 0x1a6   : > { %p608_p7 = pnand %p1174_p5, %p1173_p3 }
 0x1a8   : > { %p609_p2 = pneg %p608_p7 }
 0x1aa   : > { %843 = dma.done.wait (%p609_p2), %s410_s8, 64  }
 0x1ab   : > { %845 = vsyncadd (%p609_p2), %s410_s8, 4294967232  ;;  %s1175_s9 = sadd.s32 4294967294, %s872_s20  }
 0x1ac   : > { %s418_s27 = sand.u32 1, %s1175_s9  }
 0x1ad   : > { %s419_s21 = scalar_lea.sflag [#allocation9], %s418_s27 }
 0x1ae   : > { %847 = dma.done.wait (%p609_p2), %s419_s21, 128  }
 0x1af   : > { %849 = vsyncadd (%p609_p2), %s419_s21, 4294967168  ;;  %s25_s20 = sadd.s32 1, %s872_s20   ;;  %s1176_s15 = smov %s856_s16 }
 0x1b0   : > { %p22_p0 = scmp.ge.s32.totalorder %s25_s20, 4   ;;  %s1177_s16 = smov %s860_s17 }
 0x1b1   : > { %s1178_s17 = smov %s1004_s26  ;;  %s1179_s18 = smov %s868_s19 }
 0x1b2   : > { %s1180_s19 = smov %s1182_s29  ;;  %24 = sbr.rel (!%p22_p0) target bundleno = 11 (0xb), region = 109 }
 0x1b7   :  { %433 = vsyncpa [#allocation3], 1 }
 0x1b8   :  { %435 = vsyncpa [#allocation3 + $0x1], 1 }
 0x1b9   :  { %436 = vsyncpa [#allocation6], 1 }
 0x1ba   :  { %437 = vsyncpa [#allocation4], 1 }
 0x1bb   :  { %439 = vsyncpa [#allocation4 + $0x1], 1 }
 0x1bc   :  { %440 = vsyncpa [#allocation9], 1 }
 0x1bd   :  { %442 = vsyncpa [#allocation9 + $0x1], 1 }

</bundles_post_ra>
